<compile_context>
chip_gen: v7x
topology: tpu7x:2x2x1
jax: 0.10.0
libtpu: 0.0.40
codegen_flags: <defaults>
</compile_context>

<pallas_src>
import functools

import jax
import jax.numpy as jnp
from jax.experimental import pallas as pl
from jax.experimental.pallas import tpu as pltpu

GAMMA = 0.8
MAX_FLOW = 400.0
_TARGET_TILE_ELEMS = 2048 * 512      # ~4 MiB per f32 pred tile (fits v7x 64 MiB VMEM)


def _round_up(x, m):
    return ((x + m - 1) // m) * m


def _pick_tile_rows(rows, padded_lanes, tile_rows):
    """Rows per spatial tile: multiple of 32, ~_TARGET_TILE_ELEMS elems, >=4 tiles if possible."""
    if tile_rows is None:
        tile_rows = max(32, ((_TARGET_TILE_ELEMS // padded_lanes) // 32) * 32)
    else:
        tile_rows = max(32, _round_up(tile_rows, 32))
    # v7x has 2 TensorCores; the "parallel" spatial axis is how work splits across them.
    tm = min(tile_rows, max(32, _round_up(pl.cdiv(rows, 4), 32)))
    return tm


def _disparity_criterion_kernel(w_ref, pred_ref, gt_ref, mask_ref, out_ref,
                                valid_ref, acc_ref, cnt_ref, *, n_rows, tm):
    # Grid: (spatial tile t [parallel], prediction index i [arbitrary, innermost]).
    # out_ref is an (8, 128) per-tile block; lanes of column 0 hold, per row:
    #   [0] sum_i gamma^(n-1-i) * sum(valid * |pred_i - gt|)
    #   [1] sum(valid * epe)    [2] sum(valid)
    #   [3] #(valid & epe<1)    [4] #(valid & epe<3)    [5] #(valid & epe<5)
    t = pl.program_id(0)
    i = pl.program_id(1)
    n = pl.num_programs(1)

    gt = gt_ref[...].astype(jnp.float32)

    @pl.when(i == 0)
    def _():
        # valid = mask.bool() & (|gt| < 1000) & (|gt| < 400); for C==1 the 1000 test is
        # subsumed by 400.  The row bound masks ragged-last-tile garbage rows.
        row = t * tm + jax.lax.broadcasted_iota(jnp.int32, gt_ref.shape, 0)
        valid = (mask_ref[...] != 0) & (jnp.abs(gt) < MAX_FLOW) & (row < n_rows)
        validf = valid.astype(jnp.float32)
        valid_ref[...] = validf
        cnt_ref[0] = jnp.sum(validf)                 # moved off the last (heaviest) step
        acc_ref[...] = jnp.zeros_like(acc_ref)

    validb = valid_ref[...] != 0.0

    pred = pred_ref[...].astype(jnp.float32)         # bf16 preds cast in-register
    # `where` (not multiply) so OOB NaN/Inf in the ragged last tile can't poison sums.
    diff = jnp.where(validb, jnp.abs(pred - gt), 0.0)

    # Per-lane partial (8, W): sublane-preserving reshape + slab adds -> pure VALU,
    # no cross-lane reduce and no scalar round-trip on the per-step path.
    part = jnp.sum(diff.reshape(tm // 8, 8, -1), axis=0)
    acc_ref[...] += w_ref[i] * part

    @pl.when(i == n - 1)
    def _():
        # C == 1  =>  epe == |pred_last - gt|; its masked sum equals this step's
        # unweighted partial (gamma^0 == 1), so reuse `part` instead of re-reducing.
        epe_sum = jnp.sum(part)
        loss_sum = jnp.sum(acc_ref[...])
        sums = [
            loss_sum,
            epe_sum,
            cnt_ref[0],
            jnp.sum(jnp.where(validb & (diff < 1.0), 1.0, 0.0)),
            jnp.sum(jnp.where(validb & (diff < 3.0), 1.0, 0.0)),
            jnp.sum(jnp.where(validb & (diff < 5.0), 1.0, 0.0)),
        ]
        row_id = jax.lax.broadcasted_iota(jnp.int32, (8, 128), 0)
        block = jnp.zeros((8, 128), jnp.float32)
        for j, v in enumerate(sums):
            block = jnp.where(row_id == j, v, block)
        out_ref[...] = block


def disparity_criterion(preds, disp_gt, disp_mask, gamma=GAMMA, tile_rows=None):
    """preds: (N, B, 1, H, W) up_flow predictions (f32 or bf16);
    disp_gt: (B, 1, H, W); disp_mask: (B, 1, H, W) any dtype (!=0 means valid).

    Returns (flow_loss, metrics, epe_per_iter) with jnp-scalar metrics.
    """
    n = preds.shape[0]
    B, C, H, W = disp_gt.shape
    assert C == 1, "disparity criterion assumes a single channel"
    assert preds.shape[1:] == disp_gt.shape == disp_mask.shape
    total = B * C * H * W
    rows = B * C * H

    tm = _pick_tile_rows(rows, _round_up(W, 128), tile_rows)
    num_tiles = pl.cdiv(rows, tm)

    # Free reshapes only — no padding, no extra copies of the prediction stack.
    preds3 = preds.reshape(n, rows, W)                 # native dtype, cast in-kernel
    gt2 = disp_gt.reshape(rows, W)
    mask2 = disp_mask.reshape(rows, W)
    if mask2.dtype == jnp.bool_:
        mask2 = mask2.astype(jnp.int8)                 # 1-byte stream, cheap cast
    weights = jnp.array([gamma ** (n - 1 - i) for i in range(n)], jnp.float32)

    kernel = functools.partial(_disparity_criterion_kernel, n_rows=rows, tm=tm)

    partials = pl.pallas_call(
        kernel,
        out_shape=jax.ShapeDtypeStruct((num_tiles, 8, 128), jnp.float32),
        grid_spec=pltpu.PrefetchScalarGridSpec(
            num_scalar_prefetch=0,
            grid=(num_tiles, n),
            in_specs=[
                # gamma weights: whole (n,) array in SMEM
                pl.BlockSpec(memory_space=pltpu.MemorySpace.SMEM),
                # pred_i spatial tile, streamed along the reduction (prediction) axis
                pl.BlockSpec((pl.Squeezed(), tm, W), lambda t, i: (i, t, 0)),
                # gt / mask tiles stay resident across the reduction axis
                pl.BlockSpec((tm, W), lambda t, i: (t, 0)),
                pl.BlockSpec((tm, W), lambda t, i: (t, 0)),
            ],
            out_specs=pl.BlockSpec((pl.Squeezed(), 8, 128), lambda t, i: (t, 0, 0)),
            scratch_shapes=[
                pltpu.VMEM((tm, W), jnp.float32),      # valid mask, built once per tile
                pltpu.VMEM((8, W), jnp.float32),       # per-lane weighted-L1 accumulator
                pltpu.SMEM((1,), jnp.float32),         # per-tile valid count
            ],
        ),
        compiler_params=pltpu.CompilerParams(
            dimension_semantics=("parallel", "arbitrary"),
            vmem_limit_bytes=48 * 1024 * 1024,         # safe on v7x (64 MiB physical)
        ),
    )(weights, preds3, gt2, mask2)

    sums = jnp.sum(partials[:, :, 0], axis=0)          # (8,), rows 0..5 used
    cnt = sums[2]                                      # NOTE: NaN if no valid pixels (matches torch)
    flow_loss = sums[0] / jnp.float32(total)           # .mean() over ALL pixels (as in torch)
    metrics = {
        "loss": flow_loss,
        "epe": sums[1] / cnt,
        "1px": sums[3] / cnt,
        "3px": sums[4] / cnt,
        "5px": sums[5] / cnt,
    }
    # TODO(synk): compute_per_iter masked-selects a ragged (data-dependent length) EPE
    # vector per iteration; no fixed-shape Pallas equivalent, so it stays None.
    epe_per_iter = None
    return flow_loss, metrics, epe_per_iter


def _reference(preds, disp_gt, disp_mask, gamma=GAMMA):
    """Pure-jnp transcription of the PyTorch module (C-general)."""
    n = preds.shape[0]
    gt = disp_gt.astype(jnp.float32)
    mask = disp_mask.astype(jnp.float32)
    mag = jnp.sqrt(jnp.sum(gt ** 2, axis=1, keepdims=True))
    valid = (mask != 0.0) & (jnp.abs(gt) < 1000.0) & (mag < MAX_FLOW)
    validf = valid.astype(jnp.float32)
    loss = 0.0
    for i in range(n):
        w = gamma ** (n - i - 1)
        loss = loss + w * jnp.mean(validf * jnp.abs(preds[i].astype(jnp.float32) - gt))
    epe = jnp.sqrt(jnp.sum((preds[-1].astype(jnp.float32) - gt) ** 2, axis=1))
    vf = validf[:, 0]
    cnt = jnp.sum(vf)
    return (
        loss,
        jnp.sum(epe * vf) / cnt,
        jnp.sum(vf * (epe < 1.0)) / cnt,
        jnp.sum(vf * (epe < 3.0)) / cnt,
        jnp.sum(vf * (epe < 5.0)) / cnt,
    )


def _check(name, ref, got, tol=1e-3):
    ref = float(ref)
    got = float(got)
    assert abs(ref - got) <= tol * max(1.0, abs(ref)), (name, ref, got)


def _run_case(key, B, H, W, n_pred, pred_dtype=jnp.float32, mask_dtype=jnp.float32,
              **kwargs):
    k1, k2, k3 = jax.random.split(key, 3)
    C = 1
    disp_gt = jax.random.uniform(k1, (B, C, H, W), jnp.float32, 0.0, 60.0)
    disp_mask = (jax.random.uniform(k2, (B, C, H, W)) > 0.2).astype(mask_dtype)
    noise = jax.random.normal(k3, (n_pred, B, C, H, W), jnp.float32)
    scale = jnp.arange(n_pred, 0, -1, dtype=jnp.float32)[:, None, None, None, None]
    preds = (disp_gt[None] + noise * scale).astype(pred_dtype)

    flow_loss, metrics, _ = disparity_criterion(preds, disp_gt, disp_mask, **kwargs)
    jax.block_until_ready(flow_loss)
    jax.block_until_ready(metrics["epe"])

    ref_loss, ref_epe, ref_1, ref_3, ref_5 = _reference(preds, disp_gt, disp_mask)
    _check("loss", ref_loss, metrics["loss"])
    _check("epe", ref_epe, metrics["epe"])
    _check("1px", ref_1, metrics["1px"])
    _check("3px", ref_3, metrics["3px"])
    _check("5px", ref_5, metrics["5px"])


if __name__ == "__main__":
    key = jax.random.PRNGKey(0)
    k_a, k_b = jax.random.split(key)

    # Small case: f32 preds / f32 mask, 32 rows x 16 lanes, single exact tile.
    _run_case(k_a, B=2, H=16, W=16, n_pred=3)

    # Multi-tile + ragged-last-tile path with narrow streams: bf16 preds, int8 mask,
    # 48 rows x 200 lanes -> 2 tiles of 32 rows (last tile ragged, 16 real rows).
    _run_case(k_b, B=2, H=24, W=200, n_pred=4,
              pred_dtype=jnp.bfloat16, mask_dtype=jnp.int8)

    print("KERNEL_OK")
</pallas_src>

<mosaic_0001>
module attributes {stable_mosaic.version = 11 : i64} {
  func.func @_disparity_criterion_kernel(%arg0: i32, %arg1: i32, %arg2: memref<3xf32, #tpu.memory_space<smem>>, %arg3: memref<1x32x16xf32, #tpu.memory_space<vmem>>, %arg4: memref<32x16xf32, #tpu.memory_space<vmem>>, %arg5: memref<32x16xf32, #tpu.memory_space<vmem>>, %arg6: memref<1x8x128xf32, #tpu.memory_space<vmem>>, %arg7: memref<32x16xf32, #tpu.memory_space<vmem>>, %arg8: memref<8x16xf32, #tpu.memory_space<vmem>>, %arg9: memref<1xf32, #tpu.memory_space<smem>>) attributes {dimension_semantics = [#tpu.dimension_semantics<parallel>, #tpu.dimension_semantics<arbitrary>], iteration_bounds = array<i64: 1, 3>, scalar_prefetch = 0 : i64, scratch_operands = 3 : i64, tpu.core_type = #tpu.core_type<tc>, window_params = [{transform_indices = @transform_0, window_bounds = array<i64: 3>}, {transform_indices = @transform_1, window_bounds = array<i64: 1, 32, 16>}, {transform_indices = @transform_2, window_bounds = array<i64: 32, 16>}, {transform_indices = @transform_3, window_bounds = array<i64: 32, 16>}, {transform_indices = @transform_4, window_bounds = array<i64: 1, 8, 128>}]} {
    %c0 = arith.constant 0 : index
    %c0_0 = arith.constant 0 : index
    %0 = vector.load %arg4[%c0, %c0_0] : memref<32x16xf32, #tpu.memory_space<vmem>>, vector<32x16xf32>
    %c0_i32 = arith.constant 0 : i32
    %1 = arith.cmpi eq, %arg1, %c0_i32 : i32
    %2 = arith.extui %1 : i1 to i32
    %c0_i32_1 = arith.constant 0 : i32
    %3 = arith.cmpi ne, %2, %c0_i32_1 : i32
    scf.if %3 {
      %c32_i32 = arith.constant 32 : i32
      %25 = arith.muli %arg0, %c32_i32 : i32
      %26 = tpu.iota {dimensions = array<i32: 0>} : vector<32x16xi32>
      %27 = vector.broadcast %25 : i32 to vector<32x16xi32>
      %28 = arith.addi %27, %26 : vector<32x16xi32>
      %c0_14 = arith.constant 0 : index
      %c0_15 = arith.constant 0 : index
      %29 = vector.load %arg5[%c0_14, %c0_15] : memref<32x16xf32, #tpu.memory_space<vmem>>, vector<32x16xf32>
      %cst_16 = arith.constant 0.000000e+00 : f32
      %30 = vector.broadcast %cst_16 : f32 to vector<32x16xf32>
      %31 = arith.cmpf one, %29, %30 : vector<32x16xf32>
      %32 = math.absf %0 : vector<32x16xf32>
      %cst_17 = arith.constant 4.000000e+02 : f32
      %33 = vector.broadcast %cst_17 : f32 to vector<32x16xf32>
      %34 = arith.cmpf olt, %32, %33 : vector<32x16xf32>
      %35 = arith.andi %31, %34 : vector<32x16xi1>
      %c32_i32_18 = arith.constant 32 : i32
      %36 = vector.broadcast %c32_i32_18 : i32 to vector<32x16xi32>
      %37 = arith.cmpi slt, %28, %36 : vector<32x16xi32>
      %38 = arith.andi %35, %37 : vector<32x16xi1>
      %39 = arith.extui %38 : vector<32x16xi1> to vector<32x16xi32>
      %40 = arith.sitofp %39 : vector<32x16xi32> to vector<32x16xf32>
      %c0_19 = arith.constant 0 : index
      %c0_20 = arith.constant 0 : index
      %41 = vector.load %arg7[%c0_19, %c0_20] : memref<32x16xf32, #tpu.memory_space<vmem>>, vector<32x16xf32>
      tpu.vector_store %arg7[%c0_19, %c0_20], %40 {strides = array<i32>} : memref<32x16xf32, #tpu.memory_space<vmem>>, vector<32x16xf32>,
      %42 = vector.shape_cast %40 : vector<32x16xf32> to vector<1x32x16xf32>
      %cst_21 = arith.constant dense<0.000000e+00> : vector<1xf32>
      %43 = vector.multi_reduction <add>, %42, %cst_21 [1, 2] : vector<1x32x16xf32> to vector<1xf32>
      %44 = vector.shape_cast %43 : vector<1xf32> to vector<1x1x1xf32>
      %45 = vector.extract %44[0, 0, 0] : f32 from vector<1x1x1xf32>
      %c0_22 = arith.constant 0 : index
      %46 = memref.load %arg9[%c0_22] : memref<1xf32, #tpu.memory_space<smem>>
      memref.store %45, %arg9[%c0_22] : memref<1xf32, #tpu.memory_space<smem>>
      %cst_23 = arith.constant 0.000000e+00 : f32
      %47 = vector.broadcast %cst_23 : f32 to vector<8x16xf32>
      %c0_24 = arith.constant 0 : index
      %c0_25 = arith.constant 0 : index
      %48 = vector.load %arg8[%c0_24, %c0_25] : memref<8x16xf32, #tpu.memory_space<vmem>>, vector<8x16xf32>
      tpu.vector_store %arg8[%c0_24, %c0_25], %47 {strides = array<i32>} : memref<8x16xf32, #tpu.memory_space<vmem>>, vector<8x16xf32>,
    } else {
    }
    %c0_2 = arith.constant 0 : index
    %c0_3 = arith.constant 0 : index
    %4 = vector.load %arg7[%c0_2, %c0_3] : memref<32x16xf32, #tpu.memory_space<vmem>>, vector<32x16xf32>
    %cst = arith.constant 0.000000e+00 : f32
    %5 = vector.broadcast %cst : f32 to vector<32x16xf32>
    %6 = arith.cmpf one, %4, %5 : vector<32x16xf32>
    %c0_4 = arith.constant 0 : index
    %c0_5 = arith.constant 0 : index
    %c0_6 = arith.constant 0 : index
    %7 = vector.load %arg3[%c0_4, %c0_5, %c0_6] : memref<1x32x16xf32, #tpu.memory_space<vmem>>, vector<1x32x16xf32>
    %8 = vector.shape_cast %7 : vector<1x32x16xf32> to vector<32x16xf32>
    %9 = arith.subf %8, %0 : vector<32x16xf32>
    %10 = math.absf %9 : vector<32x16xf32>
    %cst_7 = arith.constant 0.000000e+00 : f32
    %11 = vector.broadcast %cst_7 : f32 to vector<32x16xf32>
    %12 = arith.select %6, %10, %11 : vector<32x16xi1>, vector<32x16xf32>
    %13 = vector.shape_cast %12 : vector<32x16xf32> to vector<4x8x16xf32>
    %cst_8 = arith.constant dense<0.000000e+00> : vector<8x16xf32>
    %14 = vector.multi_reduction <add>, %13, %cst_8 [0] : vector<4x8x16xf32> to vector<8x16xf32>
    %c0_9 = arith.constant 0 : index
    %c0_10 = arith.constant 0 : index
    %15 = vector.load %arg8[%c0_9, %c0_10] : memref<8x16xf32, #tpu.memory_space<vmem>>, vector<8x16xf32>
    %16 = arith.index_cast %arg1 : i32 to index
    %17 = memref.load %arg2[%16] : memref<3xf32, #tpu.memory_space<smem>>
    %18 = vector.broadcast %17 : f32 to vector<8x16xf32>
    %19 = arith.mulf %18, %14 : vector<8x16xf32>
    %20 = arith.addf %15, %19 : vector<8x16xf32>
    %c0_11 = arith.constant 0 : index
    %c0_12 = arith.constant 0 : index
    %21 = vector.load %arg8[%c0_11, %c0_12] : memref<8x16xf32, #tpu.memory_space<vmem>>, vector<8x16xf32>
    tpu.vector_store %arg8[%c0_11, %c0_12], %20 {strides = array<i32>} : memref<8x16xf32, #tpu.memory_space<vmem>>, vector<8x16xf32>,
    %c2_i32 = arith.constant 2 : i32
    %22 = arith.cmpi eq, %arg1, %c2_i32 : i32
    %23 = arith.extui %22 : i1 to i32
    %c0_i32_13 = arith.constant 0 : i32
    %24 = arith.cmpi ne, %23, %c0_i32_13 : i32
    scf.if %24 {
      %25 = vector.shape_cast %14 : vector<8x16xf32> to vector<1x8x16xf32>
      %cst_14 = arith.constant dense<0.000000e+00> : vector<1xf32>
      %26 = vector.multi_reduction <add>, %25, %cst_14 [1, 2] : vector<1x8x16xf32> to vector<1xf32>
      %27 = vector.shape_cast %26 : vector<1xf32> to vector<1x1x1xf32>
      %28 = vector.extract %27[0, 0, 0] : f32 from vector<1x1x1xf32>
      %c0_15 = arith.constant 0 : index
      %c0_16 = arith.constant 0 : index
      %29 = vector.load %arg8[%c0_15, %c0_16] : memref<8x16xf32, #tpu.memory_space<vmem>>, vector<8x16xf32>
      %30 = vector.shape_cast %29 : vector<8x16xf32> to vector<1x8x16xf32>
      %cst_17 = arith.constant dense<0.000000e+00> : vector<1xf32>
      %31 = vector.multi_reduction <add>, %30, %cst_17 [1, 2] : vector<1x8x16xf32> to vector<1xf32>
      %32 = vector.shape_cast %31 : vector<1xf32> to vector<1x1x1xf32>
      %33 = vector.extract %32[0, 0, 0] : f32 from vector<1x1x1xf32>
      %c0_18 = arith.constant 0 : index
      %34 = memref.load %arg9[%c0_18] : memref<1xf32, #tpu.memory_space<smem>>
      %cst_19 = arith.constant 1.000000e+00 : f32
      %35 = vector.broadcast %cst_19 : f32 to vector<32x16xf32>
      %36 = arith.cmpf olt, %12, %35 : vector<32x16xf32>
      %37 = arith.andi %6, %36 : vector<32x16xi1>
      %cst_20 = arith.constant 1.000000e+00 : f32
      %cst_21 = arith.constant 0.000000e+00 : f32
      %38 = vector.broadcast %cst_20 : f32 to vector<32x16xf32>
      %39 = vector.broadcast %cst_21 : f32 to vector<32x16xf32>
      %40 = arith.select %37, %38, %39 : vector<32x16xi1>, vector<32x16xf32>
      %41 = vector.shape_cast %40 : vector<32x16xf32> to vector<1x32x16xf32>
      %cst_22 = arith.constant dense<0.000000e+00> : vector<1xf32>
      %42 = vector.multi_reduction <add>, %41, %cst_22 [1, 2] : vector<1x32x16xf32> to vector<1xf32>
      %43 = vector.shape_cast %42 : vector<1xf32> to vector<1x1x1xf32>
      %44 = vector.extract %43[0, 0, 0] : f32 from vector<1x1x1xf32>
      %cst_23 = arith.constant 3.000000e+00 : f32
      %45 = vector.broadcast %cst_23 : f32 to vector<32x16xf32>
      %46 = arith.cmpf olt, %12, %45 : vector<32x16xf32>
      %47 = arith.andi %6, %46 : vector<32x16xi1>
      %cst_24 = arith.constant 1.000000e+00 : f32
      %cst_25 = arith.constant 0.000000e+00 : f32
      %48 = vector.broadcast %cst_24 : f32 to vector<32x16xf32>
      %49 = vector.broadcast %cst_25 : f32 to vector<32x16xf32>
      %50 = arith.select %47, %48, %49 : vector<32x16xi1>, vector<32x16xf32>
      %51 = vector.shape_cast %50 : vector<32x16xf32> to vector<1x32x16xf32>
      %cst_26 = arith.constant dense<0.000000e+00> : vector<1xf32>
      %52 = vector.multi_reduction <add>, %51, %cst_26 [1, 2] : vector<1x32x16xf32> to vector<1xf32>
      %53 = vector.shape_cast %52 : vector<1xf32> to vector<1x1x1xf32>
      %54 = vector.extract %53[0, 0, 0] : f32 from vector<1x1x1xf32>
      %cst_27 = arith.constant 5.000000e+00 : f32
      %55 = vector.broadcast %cst_27 : f32 to vector<32x16xf32>
      %56 = arith.cmpf olt, %12, %55 : vector<32x16xf32>
      %57 = arith.andi %6, %56 : vector<32x16xi1>
      %cst_28 = arith.constant 1.000000e+00 : f32
      %cst_29 = arith.constant 0.000000e+00 : f32
      %58 = vector.broadcast %cst_28 : f32 to vector<32x16xf32>
      %59 = vector.broadcast %cst_29 : f32 to vector<32x16xf32>
      %60 = arith.select %57, %58, %59 : vector<32x16xi1>, vector<32x16xf32>
      %61 = vector.shape_cast %60 : vector<32x16xf32> to vector<1x32x16xf32>
      %cst_30 = arith.constant dense<0.000000e+00> : vector<1xf32>
      %62 = vector.multi_reduction <add>, %61, %cst_30 [1, 2] : vector<1x32x16xf32> to vector<1xf32>
      %63 = vector.shape_cast %62 : vector<1xf32> to vector<1x1x1xf32>
      %64 = vector.extract %63[0, 0, 0] : f32 from vector<1x1x1xf32>
      %65 = tpu.iota {dimensions = array<i32: 0>} : vector<8x128xi32>
      %cst_31 = arith.constant 0.000000e+00 : f32
      %66 = vector.broadcast %cst_31 : f32 to vector<8x128xf32>
      %c0_i32_32 = arith.constant 0 : i32
      %67 = vector.broadcast %c0_i32_32 : i32 to vector<8x128xi32>
      %68 = arith.cmpi eq, %65, %67 : vector<8x128xi32>
      %69 = vector.broadcast %33 : f32 to vector<8x128xf32>
      %70 = arith.select %68, %69, %66 : vector<8x128xi1>, vector<8x128xf32>
      %c1_i32 = arith.constant 1 : i32
      %71 = vector.broadcast %c1_i32 : i32 to vector<8x128xi32>
      %72 = arith.cmpi eq, %65, %71 : vector<8x128xi32>
      %73 = vector.broadcast %28 : f32 to vector<8x128xf32>
      %74 = arith.select %72, %73, %70 : vector<8x128xi1>, vector<8x128xf32>
      %c2_i32_33 = arith.constant 2 : i32
      %75 = vector.broadcast %c2_i32_33 : i32 to vector<8x128xi32>
      %76 = arith.cmpi eq, %65, %75 : vector<8x128xi32>
      %77 = vector.broadcast %34 : f32 to vector<8x128xf32>
      %78 = arith.select %76, %77, %74 : vector<8x128xi1>, vector<8x128xf32>
      %c3_i32 = arith.constant 3 : i32
      %79 = vector.broadcast %c3_i32 : i32 to vector<8x128xi32>
      %80 = arith.cmpi eq, %65, %79 : vector<8x128xi32>
      %81 = vector.broadcast %44 : f32 to vector<8x128xf32>
      %82 = arith.select %80, %81, %78 : vector<8x128xi1>, vector<8x128xf32>
      %c4_i32 = arith.constant 4 : i32
      %83 = vector.broadcast %c4_i32 : i32 to vector<8x128xi32>
      %84 = arith.cmpi eq, %65, %83 : vector<8x128xi32>
      %85 = vector.broadcast %54 : f32 to vector<8x128xf32>
      %86 = arith.select %84, %85, %82 : vector<8x128xi1>, vector<8x128xf32>
      %c5_i32 = arith.constant 5 : i32
      %87 = vector.broadcast %c5_i32 : i32 to vector<8x128xi32>
      %88 = arith.cmpi eq, %65, %87 : vector<8x128xi32>
      %89 = vector.broadcast %64 : f32 to vector<8x128xf32>
      %90 = arith.select %88, %89, %86 : vector<8x128xi1>, vector<8x128xf32>
      %c0_34 = arith.constant 0 : index
      %c0_35 = arith.constant 0 : index
      %c0_36 = arith.constant 0 : index
      %91 = vector.load %arg6[%c0_34, %c0_35, %c0_36] : memref<1x8x128xf32, #tpu.memory_space<vmem>>, vector<1x8x128xf32>
      %92 = vector.shape_cast %91 : vector<1x8x128xf32> to vector<8x128xf32>
      %93 = vector.shape_cast %90 : vector<8x128xf32> to vector<1x8x128xf32>
      tpu.vector_store %arg6[%c0_34, %c0_35, %c0_36], %93 {strides = array<i32>} : memref<1x8x128xf32, #tpu.memory_space<vmem>>, vector<1x8x128xf32>,
    } else {
    }
    return
  }
  func.func @transform_0(%arg0: i32, %arg1: i32) -> i32 {
    %c0_i32 = arith.constant 0 : i32
    %c0_i32_0 = arith.constant 0 : i32
    return %c0_i32 : i32
  }
  func.func @transform_1(%arg0: i32, %arg1: i32) -> (i32, i32, i32) {
    %c0_i32 = arith.constant 0 : i32
    %c0_i32_0 = arith.constant 0 : i32
    return %arg1, %arg0, %c0_i32 : i32, i32, i32
  }
  func.func @transform_2(%arg0: i32, %arg1: i32) -> (i32, i32) {
    %c0_i32 = arith.constant 0 : i32
    %c0_i32_0 = arith.constant 0 : i32
    return %arg0, %c0_i32 : i32, i32
  }
  func.func @transform_3(%arg0: i32, %arg1: i32) -> (i32, i32) {
    %c0_i32 = arith.constant 0 : i32
    %c0_i32_0 = arith.constant 0 : i32
    return %arg0, %c0_i32 : i32, i32
  }
  func.func @transform_4(%arg0: i32, %arg1: i32) -> (i32, i32, i32) {
    %c0_i32 = arith.constant 0 : i32
    %c0_i32_0 = arith.constant 0 : i32
    %c0_i32_1 = arith.constant 0 : i32
    return %arg0, %c0_i32, %c0_i32_0 : i32, i32, i32
  }
}

</mosaic_0001>

<bundles_post_ra>
// kernel: tpu_custom_call.1
= control target key start
LH: loop header
LB: loop body
LE: loop exit
PB: predicated region body
PF: predicated region fallthrough
CT: control target
= control target key end

     0   :  { %9 = vsyncpa [#allocation7], 0  ;;  %s1042_s0 = inlined_call_operand.vmem [shape: f32[3], index: 0, kind: input, shape index: {}]   ;;  %s1043_s1 = inlined_call_operand.vmem [shape: f32[3,32,16], index: 1, kind: input, shape index: {}]   ;;  %s1044_s2 = inlined_call_operand.vmem [shape: f32[32,16], index: 2, kind: input, shape index: {}]   ;;  %s1045_s3 = inlined_call_operand.vmem [shape: f32[32,16], index: 3, kind: input, shape index: {}]   ;;  %s1046_s4 = inlined_call_operand.hbm [shape: f32[1,8,128], index: 4, kind: output, shape index: {}]  }
   0x1   :  { %10 = vsyncpa [#allocation6], 0  ;;  %s809_s15 = smov 0   ;;  %s811_s16 = smov 0  }
   0x2   :  { %s813_s17 = smov 0  }
   0x3 LB: > { %s630_s18 = sadd.s32 4294967295, %s778_s17   ;;  %s25_s19 = sadd.s32 1, %s774_s16  ;;  %s778_s17 = sphi %s813_s17, %s16_s17   ;;  %s774_s16 = sphi %s811_s16, %s1051_s16   ;;  %s770_s15 = sphi %s809_s15, %s1050_s15  }
   0x4   : > { %p26_p0 = scmp.ge.s32.totalorder %s25_s19, 3  ;;  %p631_p1 = scmp.ge.s32.totalorder %s778_s17, 1 }
   0x5   : > { %p160_p2 = scmp.lt.s32.totalorder %s778_s17, 4  ;;  %p836_p4 = scmp.eq.s32.totalorder %s630_s18, 0 }
   0x6   : > { %s1053_s19 = smov (%p26_p0, %s25_s19), 0  ;;  %s173_s24 = sshll.u32 %s1042_s0, 4  ;;  %s174_s24 = int_to_ptr.vmem [resolvable:$true] %s173_s24 }
   0x7   : > { %p830_p3 = pnand %p631_p1, %p160_p2  ;;  %s707_s25 = scalar_lea.vmem %s174_s24, 16 }
   0x8   : > { %p708_p7 = scmp.ne.s32.totalorder %s174_s24, %s707_s25  ;;  %p715_p11 = scmp.lt.s32.totalorder %s174_s24, %s174_s24 }
   0x9   : > { %p671_p5 = pneg %p830_p3  ;;  %p716_p12 = scmp.lt.s32.totalorder %s707_s25, %s707_s25 }
   0xb   : > { %p672_p6 = pnand %p836_p4, %p671_p5  ;;  %p717_p13 = por %p716_p12, %p715_p11 }
   0xd   : > { %p709_p8 = pneg %p672_p6 }
   0xf   : > { %p710_p9 = pnand %p709_p8, %p708_p7 }
  0x11   : > { %p711_p10 = pneg %p710_p9 }
  0x13   : > { %p718_p0 = pnand %p717_p13, %p711_p10 }
  0x15   : > { %721 = shalt.err (!%p718_p0)
}
  0x16   : > { %s780_s26 = smov [#allocation5]   ;;  %217 = sbr.rel (%p830_p3) target bundleno = 519 (0x207), region = 36 }
  0x17   : > { %674 = dma.vmem_to_smem (!%p672_p6), %s174_s24, 16, %s780_s26, [#allocation7]  }
  0x1d   : > { %761 = dma.done.wait (%p836_p4), [#allocation7], 16  }
  0x1e   : > { %763 = vsyncadd (%p836_p4), [#allocation7], 4294967280 }
  0x1f   : > { %223 = sfence }
  0x20   : > { %p254_p1 = scmp.lt.s32.totalorder %s770_s15, 2  ;;  %v857_v0 = vld [vmem:[%s1044_s2] sm:$0xff]  ;;  %v862_v1 = vld [vmem:[%s1044_s2 + $0x8] sm:$0xff]  ;;  %v867_v2 = vld [vmem:[%s1044_s2 + $0x10] sm:$0xff]  ;;  %p640_p2 = scmp.ne.s32.totalorder %s770_s15, 0 }
  0x21   : > { %v872_v3 = vld [vmem:[%s1044_s2 + $0x18] sm:$0xff]  ;;  %v294_v4 = vld [vmem:[%s1045_s3] sm:$0xff] (!%p640_p2)  ;;  %v295_v5 = vld [vmem:[%s1045_s3 + $0x8] sm:$0xff] (!%p640_p2)  ;;  %v302_v7 = vand.u32 (!%p640_p2), 2147483647, %v857_v0  ;;  %vm330_vm7 = vcmask (!%p640_p2), 130048  }
  0x22   : > { %s255_s9 = scalar_select %p254_p1, %s770_s15, 2 }
  0x23   : > { %282 = sbr.rel (%p640_p2) target bundleno = 253 (0xfd), region = 44  ;;  %v296_v6 = vld [vmem:[%s1045_s3 + $0x10] sm:$0xff] (!%p640_p2)  ;;  %v297_v8 = vld [vmem:[%s1045_s3 + $0x18] sm:$0xff] (!%p640_p2)  ;;  %vm298_vm0 = vcmp.ne.f32.partialorder (!%p640_p2), %v294_v4, 0.0  ;;  %vm299_vm1 = vcmp.ne.f32.partialorder (!%p640_p2), %v295_v5, 0.0  ;;  %vm306_vm3 = vcmp.lt.f32.partialorder (!%p640_p2), %v302_v7, 400.0 }
  0x24   : > { %s650_s10 = sshll.u32 %s255_s9, 5  ;;  %v303_v9 = vand.u32 (!%p640_p2), 2147483647, %v862_v1  ;;  %vm300_vm2 = vcmp.ne.f32.partialorder (!%p640_p2), %v296_v6, 0.0  ;;  %v304_v10 = vand.u32 (!%p640_p2), 2147483647, %v867_v2  ;;  %vm310_vm6 = vmand (!%p640_p2), %vm298_vm0, %vm306_vm3 }
  0x25   : > { %s878_s13 = scalar_lea.vmem %s1043_s1, %s650_s10  ;;  %v305_v11 = vand.u32 (!%p640_p2), 2147483647, %v872_v3  ;;  %vm301_vm4 = vcmp.ne.f32.partialorder (!%p640_p2), %v297_v8, 0.0  ;;  %v781_v12 = vmov (!%p640_p2), 0.0  }
  0x26   : > { %vm307_vm5 = vcmp.lt.f32.partialorder (!%p640_p2), %v303_v9, 400.0  ;;  %vm308_vm8 = vcmp.lt.f32.partialorder (!%p640_p2), %v304_v10, 400.0  ;;  %v641_v13 = vsel (!%p640_p2), %vm310_vm6, 1.0, %v781_v12  ;;  %353 = vst.msk [vmem:[#allocation3] sm:$0xff] (!%p640_p2), %vm330_vm7, %v781_v12 }
  0x27   : > { %vm309_vm9 = vcmp.lt.f32.partialorder (!%p640_p2), %v305_v11, 400.0  ;;  %vm311_vm10 = vmand (!%p640_p2), %vm299_vm1, %vm307_vm5  ;;  %331 = vst.msk [vmem:[#allocation2] sm:$0xff] (!%p640_p2), %vm330_vm7, %v641_v13  ;;  %v335_v15 = vsel (!%p640_p2), %vm330_vm7, %v641_v13, 0.0 }
  0x28   : > { %vm312_vm11 = vmand (!%p640_p2), %vm300_vm2, %vm308_vm8  ;;  %v642_v14 = vsel (!%p640_p2), %vm311_vm10, 1.0, %v781_v12 }
  0x29   : > { %vm313_vm12 = vmand (!%p640_p2), %vm301_vm4, %vm309_vm9  ;;  %v643_v16 = vsel (!%p640_p2), %vm312_vm11, 1.0, %v781_v12  ;;  %332 = vst.msk [vmem:[#allocation2 + $0x8] sm:$0xff] (!%p640_p2), %vm330_vm7, %v642_v14  ;;  %v336_v17 = vsel (!%p640_p2), %vm330_vm7, %v642_v14, 0.0 }
  0x2a   : > { %v644_v18 = vsel %vm313_vm12, 1.0, %v781_v12  ;;  %333 = vst.msk [vmem:[#allocation2 + $0x10] sm:$0xff] %vm330_vm7, %v643_v16  ;;  %v337_v19 = vadd.f32 %v336_v17, %v335_v15  ;;  %v338_v20 = vsel %vm330_vm7, %v643_v16, 0.0 }
  0x2b   : > { %334 = vst.msk [vmem:[#allocation2 + $0x18] sm:$0xff] %vm330_vm7, %v644_v18  ;;  %v340_v21 = vsel %vm330_vm7, %v644_v18, 0.0 }
  0x2c   : > { %v339_v22 = vadd.f32 %v338_v20, %v337_v19 }
  0x2e   : > { %v341_v23 = vadd.f32 %v340_v21, %v339_v22 }
  0x30   : > { %342 = vadd.xlane.f32.xlu0 %v341_v23 }
  0xbd   : > { %v343_v24 = vpop.xlane.xlu0 %342 }
  0xbe   : > { %v344_v25 = vrot.slane %v343_v24, 4 }
  0xc0   : > { %v345_v26 = vadd.f32 %v344_v25, %v343_v24 }
  0xc2   : > { %v346_v27 = vrot.slane %v345_v26, 2 }
  0xc4   : > { %v347_v28 = vadd.f32 %v346_v27, %v345_v26 }
  0xc6   : > { %v348_v29 = vrot.slane %v347_v28, 1 }
  0xc8   : > { %v349_v30 = vadd.f32 %v348_v29, %v347_v28 }
  0xca   : > { %651 = vpush %v349_v30 }
  0xfb   : > { %s652_s27 = spop %651 }
  0xfc   : > { %352 = sst [smem:[#allocation4]] %s652_s27 }
  0xfd PF: > { %v912_v34 = vld [vmem:[#allocation2 + $0x18] sm:$0xff]  ;;  %v362_v35 = vld [vmem:[%s878_s13] sm:$0xff]  ;;  %v363_v36 = vld [vmem:[%s878_s13 + $0x8] sm:$0xff]  ;;  %vm378_vm13 = vcmask 130048   ;;  %s387_s28 = sld [smem:[#allocation5 + %s770_s15]]  ;;  %p645_p3 = scmp.ne.s32.totalorder %s770_s15, 2 }
  0xfe   : > { %v364_v37 = vld [vmem:[%s878_s13 + $0x10] sm:$0xff]  ;;  %v365_v38 = vld [vmem:[%s878_s13 + $0x18] sm:$0xff]  ;;  %v366_v39 = vsub.f32 %v362_v35, %v857_v0  ;;  %v367_v40 = vsub.f32 %v363_v36, %v862_v1  ;;  %vm361_vm1 = vcmp.ne.f32.partialorder %v912_v34, 0.0  ;;  %v782_v1 = vmov (!%p645_p3), 0.0   ;;  %s417_s30 = sld [smem:[#allocation4]] (!%p645_p3) }
  0xff   : > { %v368_v41 = vsub.f32 %v364_v37, %v867_v2  ;;  %v369_v42 = vsub.f32 %v365_v38, %v872_v3 }
 0x100   : > { %v370_v43 = vand.u32 2147483647, %v366_v39  ;;  %v371_v44 = vand.u32 2147483647, %v367_v40  ;;  %v386_v59 = vld [vmem:[#allocation3] sm:$0xff] }
 0x101   : > { %v906_v31 = vld [vmem:[#allocation2] sm:$0xff]  ;;  %v372_v45 = vand.u32 2147483647, %v368_v41  ;;  %v373_v46 = vand.u32 2147483647, %v369_v42 }
 0x102   : > { %vm358_vm14 = vcmp.ne.f32.partialorder %v906_v31, 0.0 }
 0x103   : > { %v908_v32 = vld [vmem:[#allocation2 + $0x8] sm:$0xff]  ;;  %v929_v47 = vsel %vm358_vm14, %v370_v43, 0.0  ;;  %v941_v50 = vsel %vm361_vm1, %v373_v46, 0.0  ;;  %v388_v57 = vstv %s387_s28 }
 0x104   : > { %v910_v33 = vld [vmem:[#allocation2 + $0x10] sm:$0xff]  ;;  %vm359_vm15 = vcmp.ne.f32.partialorder %v908_v32, 0.0  ;;  %v379_v51 = vsel %vm378_vm13, %v929_v47, 0.0  ;;  %v384_v55 = vsel %vm378_vm13, %v941_v50, 0.0  ;;  %vm418_vm2 = vcmp.lt.f32.partialorder (!%p645_p3), %v929_v47, 1.0 }
 0x105   : > { %vm360_vm0 = vcmp.ne.f32.partialorder %v910_v33, 0.0  ;;  %v933_v48 = vsel %vm359_vm15, %v371_v44, 0.0  ;;  %vm421_vm5 = vcmp.lt.f32.partialorder (!%p645_p3), %v941_v50, 1.0  ;;  %vm422_vm6 = vmand (!%p645_p3), %vm358_vm14, %vm418_vm2  ;;  %vm474_vm8 = vcmp.lt.f32.partialorder (!%p645_p3), %v929_v47, 5.0 }
 0x106   : > { %v937_v49 = vsel %vm360_vm0, %v372_v45, 0.0  ;;  %v380_v52 = vsel %vm378_vm13, %v933_v48, 0.0  ;;  %vm419_vm3 = vcmp.lt.f32.partialorder (!%p645_p3), %v933_v48, 1.0  ;;  %v426_v2 = vsel (!%p645_p3), %vm422_vm6, 1.0, %v782_v1  ;;  %vm425_vm11 = vmand (!%p645_p3), %vm361_vm1, %vm421_vm5 }
 0x107   : > { %v381_v53 = vadd.f32 %v380_v52, %v379_v51  ;;  %v382_v54 = vsel %vm378_vm13, %v937_v49, 0.0  ;;  %vm420_vm4 = vcmp.lt.f32.partialorder (!%p645_p3), %v937_v49, 1.0  ;;  %vm423_vm7 = vmand (!%p645_p3), %vm359_vm15, %vm419_vm3  ;;  %v430_v4 = vsel (!%p645_p3), %vm378_vm13, %v426_v2, 0.0 }
 0x108   : > { %vm424_vm9 = vmand (!%p645_p3), %vm360_vm0, %vm420_vm4  ;;  %v427_v3 = vsel (!%p645_p3), %vm423_vm7, 1.0, %v782_v1  ;;  %vm475_vm10 = vcmp.lt.f32.partialorder (!%p645_p3), %v933_v48, 5.0  ;;  %vm476_vm12 = vcmp.lt.f32.partialorder (!%p645_p3), %v937_v49, 5.0  ;;  %v429_v7 = vsel (!%p645_p3), %vm425_vm11, 1.0, %v782_v1 }
 0x109   : > { %v383_v56 = vadd.f32 %v382_v54, %v381_v53  ;;  %v428_v5 = vsel (!%p645_p3), %vm424_vm9, 1.0, %v782_v1  ;;  %v431_v6 = vsel (!%p645_p3), %vm378_vm13, %v427_v3, 0.0  ;;  %vm477_vm2 = vcmp.lt.f32.partialorder (!%p645_p3), %v941_v50, 5.0  ;;  %vm478_vm3 = vmand (!%p645_p3), %vm358_vm14, %vm474_vm8 }
 0x10a   : > { %v432_v8 = vadd.f32 (!%p645_p3), %v431_v6, %v430_v4  ;;  %v433_v9 = vsel (!%p645_p3), %vm378_vm13, %v428_v5, 0.0  ;;  %v435_v10 = vsel (!%p645_p3), %vm378_vm13, %v429_v7, 0.0  ;;  %vm479_vm4 = vmand (!%p645_p3), %vm359_vm15, %vm475_vm10  ;;  %v482_v11 = vsel (!%p645_p3), %vm478_vm3, 1.0, %v782_v1 }
 0x10b   : > { %v385_v58 = vadd.f32 %v384_v55, %v383_v56  ;;  %395 = sbr.rel (%p645_p3) target bundleno = 494 (0x1ee), region = 48  ;;  %vm446_vm5 = vcmp.lt.f32.partialorder (!%p645_p3), %v929_v47, 3.0  ;;  %vm480_vm6 = vmand (!%p645_p3), %vm360_vm0, %vm476_vm12  ;;  %v483_v13 = vsel (!%p645_p3), %vm479_vm4, 1.0, %v782_v1  ;;  %v486_v14 = vsel (!%p645_p3), %vm378_vm13, %v482_v11, 0.0 }
 0x10c   : > { %v434_v12 = vadd.f32 (!%p645_p3), %v433_v9, %v432_v8  ;;  %vm447_vm7 = vcmp.lt.f32.partialorder (!%p645_p3), %v933_v48, 3.0  ;;  %vm481_vm8 = vmand (!%p645_p3), %vm361_vm1, %vm477_vm2  ;;  %v484_v15 = vsel (!%p645_p3), %vm480_vm6, 1.0, %v782_v1  ;;  %v487_v16 = vsel (!%p645_p3), %vm378_vm13, %v483_v13, 0.0 }
 0x10d   : > { %v389_v60 = vmul.f32 %v388_v57, %v385_v58  ;;  %v396_v62 = vsel (!%p645_p3), %vm378_vm13, %v385_v58, 0.0  ;;  %vm448_vm9 = vcmp.lt.f32.partialorder (!%p645_p3), %v937_v49, 3.0  ;;  %vm449_vm10 = vcmp.lt.f32.partialorder (!%p645_p3), %v941_v50, 3.0  ;;  %vm450_vm11 = vmand (!%p645_p3), %vm358_vm14, %vm446_vm5 }
 0x10e   : > { %397 = vadd.xlane.f32.xlu0 (!%p645_p3), %v396_v62  ;;  %v436_v17 = vadd.f32 (!%p645_p3), %v435_v10, %v434_v12  ;;  %v485_v18 = vsel (!%p645_p3), %vm481_vm8, 1.0, %v782_v1  ;;  %v488_v19 = vadd.f32 (!%p645_p3), %v487_v16, %v486_v14  ;;  %v489_v20 = vsel (!%p645_p3), %vm378_vm13, %v484_v15, 0.0  ;;  %vm451_vm12 = vmand (!%p645_p3), %vm359_vm15, %vm447_vm7 }
 0x10f   : > { %v390_v61 = vadd.f32 %v389_v60, %v386_v59  ;;  %v491_v21 = vsel (!%p645_p3), %vm378_vm13, %v485_v18, 0.0  ;;  %v454_v22 = vsel (!%p645_p3), %vm450_vm11, 1.0, %v782_v1  ;;  %vm452_vm2 = vmand (!%p645_p3), %vm360_vm0, %vm448_vm9  ;;  %v455_v24 = vsel (!%p645_p3), %vm451_vm12, 1.0, %v782_v1 }
 0x110   : > { %437 = vadd.xlane.f32.xlu1 (!%p645_p3), %v436_v17  ;;  %v490_v23 = vadd.f32 (!%p645_p3), %v489_v20, %v488_v19  ;;  %v458_v25 = vsel (!%p645_p3), %vm378_vm13, %v454_v22, 0.0  ;;  %vm453_vm3 = vmand (!%p645_p3), %vm361_vm1, %vm449_vm10  ;;  %v456_v26 = vsel (!%p645_p3), %vm452_vm2, 1.0, %v782_v1  ;;  %v459_v27 = vsel (!%p645_p3), %vm378_vm13, %v455_v24, 0.0 }
 0x111   : > { %391 = vst.msk [vmem:[#allocation3] sm:$0xff] %vm378_vm13, %v390_v61  ;;  %v457_v29 = vsel (!%p645_p3), %vm453_vm3, 1.0, %v782_v1  ;;  %v460_v30 = vadd.f32 (!%p645_p3), %v459_v27, %v458_v25  ;;  %v461_v31 = vsel (!%p645_p3), %vm378_vm13, %v456_v26, 0.0  ;;  %v502_v6 = vlaneseq (!%p645_p3) }
 0x112   : > { %v492_v28 = vadd.f32 %v491_v21, %v490_v23  ;;  %v463_v32 = vsel %vm378_vm13, %v457_v29, 0.0  ;;  %v511_v12 = vstv %s417_s30 }
 0x113   : > { %v462_v35 = vadd.f32 %v461_v31, %v460_v30  ;;  %v503_v7 = vshrl.u32 %v502_v6, 7 }
 0x115   : > { %v464_v33 = vadd.f32 %v463_v32, %v462_v35  ;;  %vm507_vm14 = vcmp.eq.s32.totalorder %v503_v7, 1  ;;  %vm510_vm15 = vcmp.eq.s32.totalorder %v503_v7, 2  ;;  %vm513_vm0 = vcmp.eq.s32.totalorder %v503_v7, 3 }
 0x116   : > { %vm516_vm1 = vcmp.eq.s32.totalorder %v503_v7, 4  ;;  %vm519_vm4 = vcmp.eq.s32.totalorder %v503_v7, 5 }
 0x117   : > { %465 = vadd.xlane.f32.xlu1 %v464_v33 }
 0x118   : > { %v406_v63 = vld [vmem:[#allocation3] sm:$0xff] }
 0x119   : > { %v407_v0 = vsel %vm378_vm13, %v406_v63, 0.0  ;;  %vm504_vm13 = vcmp.eq.s32.totalorder %v503_v7, 0 }
 0x11a   : > { %408 = vadd.xlane.f32.xlu0 %v407_v0 }
 0x11e   : > { %493 = vadd.xlane.f32.xlu0 %v492_v28 }
 0x19b   : > { %v398_v36 = vpop.xlane.xlu0 %397 }
 0x19c   : > { %v399_v37 = vrot.slane %v398_v36, 4 }
 0x19d   : > { %v438_v45 = vpop.xlane.xlu1 %437 }
 0x19e   : > { %v400_v38 = vadd.f32 %v399_v37, %v398_v36  ;;  %v439_v46 = vrot.slane %v438_v45, 4 }
 0x1a0   : > { %v401_v34 = vrot.slane %v400_v38, 2  ;;  %v440_v49 = vadd.f32 %v439_v46, %v438_v45 }
 0x1a2   : > { %v402_v42 = vadd.f32 %v401_v34, %v400_v38  ;;  %v441_v52 = vrot.slane %v440_v49, 2 }
 0x1a4   : > { %v403_v44 = vrot.slane %v402_v42, 1  ;;  %v442_v56 = vadd.f32 %v441_v52, %v440_v49  ;;  %v466_v57 = vpop.xlane.xlu1 %465 }
 0x1a5   : > { %v467_v59 = vrot.slane %v466_v57, 4 }
 0x1a6   : > { %v404_v47 = vadd.f32 %v403_v44, %v402_v42  ;;  %v443_v60 = vrot.slane %v442_v56, 1 }
 0x1a7   : > { %v409_v39 = vpop.xlane.xlu0 %408  ;;  %v468_v61 = vadd.f32 %v467_v59, %v466_v57 }
 0x1a8   : > { %v410_v40 = vrot.slane %v409_v39, 4  ;;  %653 = vpush %v404_v47  ;;  %v444_v62 = vadd.f32 %v443_v60, %v442_v56 }
 0x1a9   : > { %v469_v0 = vrot.slane %v468_v61, 2 }
 0x1aa   : > { %v411_v41 = vadd.f32 %v410_v40, %v409_v39 }
 0x1ab   : > { %v494_v51 = vpop.xlane.xlu0 %493  ;;  %v470_v1 = vadd.f32 %v469_v0, %v468_v61 }
 0x1ac   : > { %v412_v43 = vrot.slane %v411_v41, 2  ;;  %v495_v53 = vrot.slane %v494_v51, 4 }
 0x1ad   : > { %v471_v3 = vrot.slane %v470_v1, 1 }
 0x1ae   : > { %v413_v48 = vadd.f32 %v412_v43, %v411_v41  ;;  %v496_v55 = vadd.f32 %v495_v53, %v494_v51 }
 0x1af   : > { %v472_v4 = vadd.f32 %v471_v3, %v470_v1 }
 0x1b0   : > { %v414_v50 = vrot.slane %v413_v48, 1  ;;  %v497_v58 = vrot.slane %v496_v55, 2 }
 0x1b2   : > { %v415_v54 = vadd.f32 %v414_v50, %v413_v48  ;;  %v498_v63 = vadd.f32 %v497_v58, %v496_v55 }
 0x1b4   : > { %655 = vpush %v415_v54  ;;  %v499_v2 = vrot.slane %v498_v63, 1 }
 0x1b5   : > { %657 = vpush %v444_v62 }
 0x1b6   : > { %v500_v5 = vadd.f32 %v499_v2, %v498_v63  ;;  %659 = vpush %v472_v4 }
 0x1b8   : > { %661 = vpush %v500_v5 }
 0x1d9   : > { %s654_s15 = spop %653 }
 0x1da   : > { %v508_v10 = vstv %s654_s15 }
 0x1e5   : > { %s656_s29 = spop %655 }
 0x1e6   : > { %v505_v8 = vstv %s656_s29  ;;  %s658_s5 = spop %657 }
 0x1e7   : > { %v506_v9 = vsel %vm504_vm13, %v505_v8, 0.0  ;;  %v514_v13 = vstv %s658_s5  ;;  %s660_s6 = spop %659 }
 0x1e8   : > { %v509_v11 = vsel %vm507_vm14, %v508_v10, %v506_v9  ;;  %v517_v16 = vstv %s660_s6 }
 0x1e9   : > { %v512_v14 = vsel %vm510_vm15, %v511_v12, %v509_v11  ;;  %s662_s7 = spop %661 }
 0x1ea   : > { %v515_v15 = vsel %vm513_vm0, %v514_v13, %v512_v14  ;;  %v520_v18 = vstv %s662_s7 }
 0x1eb   : > { %v518_v17 = vsel %vm516_vm1, %v517_v16, %v515_v15 }
 0x1ec   : > { %v521_v19 = vsel %vm519_vm4, %v520_v18, %v518_v17 }
 0x1ed   : > { %522 = vst [vmem:[#allocation8] sm:$0xff] %v521_v19 }
 0x1ee PF: > { %p1007_p4 = scmp.eq.s32.totalorder %s630_s18, 2  ;;  %s783_s9 = smov [#allocation8]  }
 0x1ef   : > { %s532_s10 = sshll.u32 %s783_s9, 4  ;;  %s533_s10 = int_to_ptr.vmem [resolvable:$true] %s532_s10 }
 0x1f0   : > { %s722_s11 = scalar_lea.vmem %s533_s10, 128  ;;  %p729_p8 = scmp.lt.s32.totalorder %s533_s10, %s533_s10 }
 0x1f1   : > { %p723_p5 = scmp.ne.s32.totalorder %s533_s10, %s722_s11  ;;  %p730_p9 = scmp.lt.s32.totalorder %s722_s11, %s722_s11 }
 0x1f3   : > { %p724_p6 = pnand %p723_p5, %p1007_p4  ;;  %p731_p10 = por %p730_p9, %p729_p8 }
 0x1f5   : > { %p725_p7 = pneg %p724_p6 }
 0x1f7   : > { %p732_p11 = pnand %p731_p10, %p725_p7 }
 0x1f9   : > { %735 = shalt.err (!%p732_p11)
}
 0x1fa   : > { %s736_s18 = scalar_lea.hbm %s1046_s4, 128 }
 0x1fb   : > { %p737_p12 = scmp.ne.s32.totalorder %s1046_s4, %s736_s18  ;;  %p742_p1 = scmp.lt.u32.totalorder %s736_s18, %s1046_s4 }
 0x1fd   : > { %p738_p13 = pnand %p737_p12, %p1007_p4 }
 0x1ff   : > { %p739_p0 = pneg %p738_p13 }
 0x201   : > { %p744_p2 = pnand %p742_p1, %p739_p0 }
 0x203   : > { %747 = shalt.err (!%p744_p2)
}
 0x204   : > { %668 = dma.vmem_to_hbm [thread:$0]  (%p1007_p4), %s533_s10, 128, %s1046_s4, [#allocation6]  }
 0x205   : > { %765 = dma.done.wait (%p1007_p4), [#allocation6], 128  }
 0x206   : > { %767 = vsyncadd (%p1007_p4), [#allocation6], 4294967168 }
 0x207 PF: > { %s16_s17 = sadd.s32 1, %s778_s17   ;;  %s1050_s15 = smov %s774_s16 }
 0x208   : > { %p13_p3 = scmp.ge.s32.totalorder %s16_s17, 5   ;;  %s1051_s16 = smov %s1053_s19 }
 0x20a   :  { %15 = sbr.rel (!%p13_p3) target bundleno = 3 (0x3), region = 84 }
 0x211   :  { %545 = vsyncpa [#allocation6], 1 }
 0x212   :  { %547 = vsyncpa [#allocation6 + $0x1], 1 }
 0x213   :  { %548 = vsyncpa [#allocation7], 1 }
 0x214   :  { %550 = vsyncpa [#allocation7 + $0x1], 1 }

</bundles_post_ra>
